<compile_context>
chip_gen: v6e
topology: v6e:2x2x1
jax: 0.10.0
libtpu: 0.0.40
codegen_flags: <defaults>
</compile_context>

<pallas_src>
import jax
import jax.numpy as jnp
from jax.experimental import pallas as pl
from jax.experimental.pallas import tpu as pltpu

# ---- small demo shapes consistent with the module (hidden = 4x expansion) ----
IN_DIMS = 32
HID_DIMS = 128
BATCH = 2
SEQ = 8


def _round_up(x, m):
    return ((x + m - 1) // m) * m


def _mlp_kernel(x_ref, w1_ref, w2_ref, o_ref):
    # x_ref : (bd, G*IN)   lane-dense packed rows (G logical rows per physical row)
    # w1_ref: (G*IN, G*HID) block-diagonal replication of hid_proj.weight.T
    # w2_ref: (G*HID, G*IN) block-diagonal replication of out_proj.weight.T
    # o_ref : (bd, G*IN)   lane-dense packed output rows
    h = jnp.dot(x_ref[...], w1_ref[...], preferred_element_type=jnp.float32)
    h = jnp.square(jnp.maximum(h, 0.0))          # relu(x)^2 in f32 on the VPU (v5e-safe)
    o_ref[...] = jnp.dot(h.astype(w2_ref.dtype), w2_ref[...],
                         preferred_element_type=jnp.float32).astype(o_ref.dtype)


def mlp_forward(x, w1_t, w2_t, *, block_rows=512, operand_dtype=jnp.bfloat16):
    """Fused MLP: out = relu(x @ w1_t)^2 @ w2_t.

    x:            (..., in_dims)
    w1_t:         (in_dims, hid_dims)   == hid_proj.weight.T
    w2_t:         (hid_dims, in_dims)   == out_proj.weight.T
    block_rows:   logical-row tile (256-512 recommended; rounded to a multiple of 8*G).
    operand_dtype: matmul operand dtype (bf16 recommended on v5e/v6e/v7x); the
                   activation and accumulation always stay f32.
    """
    orig_shape = x.shape
    in_dims = orig_shape[-1]
    hid_dims = w1_t.shape[1]
    assert w1_t.shape == (in_dims, hid_dims) and w2_t.shape == (hid_dims, in_dims)

    rows = 1
    for d in orig_shape[:-1]:
        rows *= d
    x2 = x.reshape(rows, in_dims)

    # Lane-dense packing factor: G logical rows share one 128-lane physical row.
    groups = 128 // in_dims if (in_dims <= 128 and 128 % in_dims == 0) else 1

    padded_rows = _round_up(rows, groups)
    if padded_rows != rows:
        # Rare fallback (rows % G != 0); pad is < G rows but jnp.pad copies x.
        # TODO(synk): handle the tail with a ragged/Element-indexed block instead.
        x2 = jnp.pad(x2, ((0, padded_rows - rows), (0, 0)))
    dense_rows = padded_rows // groups
    dense_in = groups * in_dims            # == 128 when packing is active
    dense_hid = groups * hid_dims

    # Free row-major view of the HBM buffer + operand-dtype cast at the boundary.
    x_dense = x2.reshape(dense_rows, dense_in).astype(operand_dtype)
    # Block-diagonal weight replication (tiny; in a full model precompute this once).
    eye = jnp.eye(groups, dtype=operand_dtype)
    w1b = jnp.kron(eye, w1_t.astype(operand_dtype))    # (dense_in,  dense_hid)
    w2b = jnp.kron(eye, w2_t.astype(operand_dtype))    # (dense_hid, dense_in)

    # Row tiling: large blocks amortize per-grid-step overhead; keep >=2 grid steps
    # when possible so v7x's two TensorCores both get work on the "parallel" axis.
    block_rows = max(block_rows, 8 * groups)
    dense_block = max(8, (block_rows // groups) // 8 * 8)
    if dense_rows <= dense_block:
        if dense_rows >= 16:
            dense_block = _round_up(pl.cdiv(dense_rows, 2), 8)   # 2 steps for v7x
        else:
            dense_block = dense_rows                             # toy/demo: 1 block
    grid = (pl.cdiv(dense_rows, dense_block),)
    # A ragged last block is fine: rows are independent and Pallas discards
    # out-of-bounds writes, so no wrapper-side padding of x is needed here.

    flops = 2 * rows * (in_dims * hid_dims + hid_dims * in_dims)
    itemsize = jnp.dtype(operand_dtype).itemsize
    bytes_accessed = (x_dense.size * itemsize
                      + w1b.size * itemsize
                      + w2b.size * itemsize
                      + padded_rows * in_dims * jnp.dtype(x.dtype).itemsize)

    out_dense = pl.pallas_call(
        _mlp_kernel,
        out_shape=jax.ShapeDtypeStruct((dense_rows, dense_in), x.dtype),
        grid_spec=pltpu.PrefetchScalarGridSpec(
            num_scalar_prefetch=0,
            grid=grid,
            in_specs=[
                # TODO(synk): on v7x, add pipeline_mode=pl.Buffered(3) here if the
                # per-step DMA is still exposed after the larger tiles.
                pl.BlockSpec((dense_block, dense_in), lambda i: (i, 0)),
                pl.BlockSpec((dense_in, dense_hid), lambda i: (0, 0)),
                pl.BlockSpec((dense_hid, dense_in), lambda i: (0, 0)),
            ],
            out_specs=pl.BlockSpec((dense_block, dense_in), lambda i: (i, 0)),
        ),
        compiler_params=pltpu.CompilerParams(
            dimension_semantics=("parallel",)),
        cost_estimate=pl.CostEstimate(
            flops=flops, transcendentals=0, bytes_accessed=bytes_accessed),
    )(x_dense, w1b, w2b)

    out = out_dense.reshape(padded_rows, in_dims)
    if padded_rows != rows:
        out = out[:rows]
    return out.reshape(orig_shape)


# -------- pure-JAX references (mirror the torch forward) --------
def reference_mlp(x, w1_t, w2_t, operand_dtype=jnp.float32):
    xd = x.astype(operand_dtype)
    h = jnp.dot(xd, w1_t.astype(operand_dtype), preferred_element_type=jnp.float32)
    h = jnp.square(jnp.maximum(h, 0.0))
    out = jnp.dot(h.astype(operand_dtype), w2_t.astype(operand_dtype),
                  preferred_element_type=jnp.float32)
    return out.astype(x.dtype)


if __name__ == "__main__":
    key = jax.random.PRNGKey(0)
    kx, k1, k2 = jax.random.split(key, 3)

    x = jax.random.normal(kx, (BATCH, SEQ, IN_DIMS), jnp.float32)
    # nn.Linear stores weight as (out, in); we pass the transpose (in, out).
    w1_t = jax.random.normal(k1, (IN_DIMS, HID_DIMS), jnp.float32) * 0.05
    w2_t = jax.random.normal(k2, (HID_DIMS, IN_DIMS), jnp.float32) * 0.05

    out = mlp_forward(x, w1_t, w2_t)
    out = jax.block_until_ready(out)
    assert out.shape == (BATCH, SEQ, IN_DIMS)
    assert out.dtype == x.dtype

    # Tight check vs a reference that uses the same operand precision path
    # (bf16 matmul operands, f32 activation/accumulation).
    ref_bf16 = reference_mlp(x, w1_t, w2_t, operand_dtype=jnp.bfloat16)
    err = jnp.max(jnp.abs(out - ref_bf16))
    assert jnp.allclose(out, ref_bf16, rtol=1e-3, atol=1e-3), f"max abs err = {err}"

    # Loose sanity check vs a full-f32 reference (documents the bf16-operand choice).
    ref_f32 = reference_mlp(x, w1_t, w2_t, operand_dtype=jnp.float32)
    err32 = jnp.max(jnp.abs(out - ref_f32))
    assert jnp.allclose(out, ref_f32, rtol=5e-2, atol=5e-2), f"max abs err vs f32 = {err32}"

    print("KERNEL_OK")
</pallas_src>

<mosaic_0001>
module attributes {stable_mosaic.version = 11 : i64} {
  func.func @_mlp_kernel(%arg0: i32, %arg1: memref<4x128xbf16, #tpu.memory_space<vmem>>, %arg2: memref<128x512xbf16, #tpu.memory_space<vmem>>, %arg3: memref<512x128xbf16, #tpu.memory_space<vmem>>, %arg4: memref<4x128xf32, #tpu.memory_space<vmem>>) attributes {dimension_semantics = [#tpu.dimension_semantics<parallel>], iteration_bounds = array<i64: 1>, scalar_prefetch = 0 : i64, scratch_operands = 0 : i64, tpu.core_type = #tpu.core_type<tc>, window_params = [{transform_indices = @transform_0, window_bounds = array<i64: 4, 128>}, {pipeline_mode = #tpu.pipeline_mode<synchronous>, transform_indices = @transform_1, window_bounds = array<i64: 128, 512>}, {pipeline_mode = #tpu.pipeline_mode<synchronous>, transform_indices = @transform_2, window_bounds = array<i64: 512, 128>}, {transform_indices = @transform_3, window_bounds = array<i64: 4, 128>}]} {
    %c0 = arith.constant 0 : index
    %c0_0 = arith.constant 0 : index
    %0 = vector.load %arg1[%c0, %c0_0] : memref<4x128xbf16, #tpu.memory_space<vmem>>, vector<4x128xbf16>
    %c0_1 = arith.constant 0 : index
    %c0_2 = arith.constant 0 : index
    %1 = vector.load %arg2[%c0_1, %c0_2] : memref<128x512xbf16, #tpu.memory_space<vmem>>, vector<128x512xbf16>
    %cst = arith.constant dense<0.000000e+00> : vector<4x512xf32>
    %2 = tpu.matmul %0, %1, %cst {dimension_numbers = #tpu.dot_dimension_numbers<[1], [0], [0], [1], [0, 0, 1, 1], [], []>} : vector<4x128xbf16>, vector<128x512xbf16>, vector<4x512xf32> -> vector<4x512xf32>
    %cst_3 = arith.constant 0.000000e+00 : f32
    %3 = vector.broadcast %cst_3 : f32 to vector<4x512xf32>
    %4 = arith.maximumf %2, %3 : vector<4x512xf32>
    %5 = arith.mulf %4, %4 : vector<4x512xf32>
    %6 = arith.truncf %5 : vector<4x512xf32> to vector<4x512xbf16>
    %c0_4 = arith.constant 0 : index
    %c0_5 = arith.constant 0 : index
    %7 = vector.load %arg3[%c0_4, %c0_5] : memref<512x128xbf16, #tpu.memory_space<vmem>>, vector<512x128xbf16>
    %cst_6 = arith.constant dense<0.000000e+00> : vector<4x128xf32>
    %8 = tpu.matmul %6, %7, %cst_6 {dimension_numbers = #tpu.dot_dimension_numbers<[1], [0], [0], [1], [0, 0, 1, 1], [], []>} : vector<4x512xbf16>, vector<512x128xbf16>, vector<4x128xf32> -> vector<4x128xf32>
    %c0_7 = arith.constant 0 : index
    %c0_8 = arith.constant 0 : index
    %9 = vector.load %arg4[%c0_7, %c0_8] : memref<4x128xf32, #tpu.memory_space<vmem>>, vector<4x128xf32>
    tpu.vector_store %arg4[%c0_7, %c0_8], %8 {strides = array<i32>} : memref<4x128xf32, #tpu.memory_space<vmem>>, vector<4x128xf32>,
    return
  }
  func.func @transform_0(%arg0: i32) -> (i32, i32) {
    %c0_i32 = arith.constant 0 : i32
    %c0_i32_0 = arith.constant 0 : i32
    return %arg0, %c0_i32 : i32, i32
  }
  func.func @transform_1(%arg0: i32) -> (i32, i32) {
    %c0_i32 = arith.constant 0 : i32
    %c0_i32_0 = arith.constant 0 : i32
    %c0_i32_1 = arith.constant 0 : i32
    return %c0_i32, %c0_i32_0 : i32, i32
  }
  func.func @transform_2(%arg0: i32) -> (i32, i32) {
    %c0_i32 = arith.constant 0 : i32
    %c0_i32_0 = arith.constant 0 : i32
    %c0_i32_1 = arith.constant 0 : i32
    return %c0_i32, %c0_i32_0 : i32, i32
  }
  func.func @transform_3(%arg0: i32) -> (i32, i32) {
    %c0_i32 = arith.constant 0 : i32
    %c0_i32_0 = arith.constant 0 : i32
    return %arg0, %c0_i32 : i32, i32
  }
}

</mosaic_0001>

<bundles_post_ra>
// kernel: tpu_custom_call.1
= control target key start
LH: loop header
LB: loop body
LE: loop exit
PB: predicated region body
PF: predicated region fallthrough
CT: control target
= control target key end

     0   :  { %8 = vsyncpa [#allocation3], 0  ;;  %s1019_s0 = inlined_call_operand.hbm [shape: bf16[4,128], index: 0, kind: input, shape index: {}]   ;;  %s1020_s1 = inlined_call_operand.hbm [shape: bf16[128,512], index: 1, kind: input, shape index: {}]   ;;  %s1021_s2 = inlined_call_operand.hbm [shape: bf16[512,128], index: 2, kind: input, shape index: {}]   ;;  %s1022_s3 = inlined_call_operand.hbm [shape: f32[4,128], index: 3, kind: output, shape index: {}]  }
   0x1   :  { %9 = vsyncpa [#allocation6], 0 }
   0x2   :  { %10 = vsyncpa [#allocation4], 0  ;;  %s978_s12 = smov [#allocation5]  }
   0x3   :  { %s26_s13 = sshll.u32 %s978_s12, 4  ;;  %s27_s13 = int_to_ptr.vmem [resolvable:$true] %s26_s13 }
   0x4   :  { %s900_s14 = scalar_lea.vmem %s27_s13, 4096  ;;  %p905_p1 = scmp.lt.s32.totalorder %s27_s13, %s27_s13 }
   0x5   :  { %p901_p0 = scmp.ne.s32.totalorder %s27_s13, %s900_s14  ;;  %p906_p2 = scmp.lt.s32.totalorder %s900_s14, %s900_s14 }
   0x7   :  { %p907_p3 = por %p906_p2, %p905_p1 }
   0x9   :  { %p908_p4 = pnand %p907_p3, %p901_p0 }
   0xb   :  { %911 = shalt.err (!%p908_p4)
}
   0xc   :  { %s979_s15 = smov 256   ;;  %s980_s16 = smov 16  }
   0xd   :  { %32 = dma.hbm_to_vmem [thread:$0]  %s1020_s1, 4096, %s27_s13, [#allocation6], %s979_s15, %s979_s15, %s980_s16  }
   0xe   :  { %s981_s19 = smov [#allocation2]   ;;  %s982_s21 = smov [#allocation7]  }
   0xf   :  { %s17_s20 = sshll.u32 %s981_s19, 4  ;;  %s38_s22 = sshll.u32 %s982_s21, 4  ;;  %s18_s20 = int_to_ptr.vmem [resolvable:$true] %s17_s20  ;;  %s39_s22 = int_to_ptr.vmem [resolvable:$true] %s38_s22 }
  0x10   :  { %s920_s23 = scalar_lea.vmem %s18_s20, 32  ;;  %p925_p6 = scmp.lt.s32.totalorder %s18_s20, %s18_s20 }
  0x11   :  { %p921_p5 = scmp.ne.s32.totalorder %s18_s20, %s920_s23  ;;  %p926_p7 = scmp.lt.s32.totalorder %s920_s23, %s920_s23 }
  0x13   :  { %p927_p8 = por %p926_p7, %p925_p6 }
  0x15   :  { %p928_p9 = pnand %p927_p8, %p921_p5 }
  0x17   :  { %931 = shalt.err (!%p928_p9)
}
  0x18   :  { %20 = dma.hbm_to_vmem [thread:$0]  %s1019_s0, 32, %s18_s20, [#allocation3]  }
  0x19   :  { %s940_s26 = scalar_lea.vmem %s39_s22, 4096  ;;  %p945_p11 = scmp.lt.s32.totalorder %s39_s22, %s39_s22 }
  0x1a   :  { %p941_p10 = scmp.ne.s32.totalorder %s39_s22, %s940_s26  ;;  %p946_p12 = scmp.lt.s32.totalorder %s940_s26, %s940_s26 }
  0x1c   :  { %p947_p13 = por %p946_p12, %p945_p11 }
  0x1e   :  { %p948_p0 = pnand %p947_p13, %p941_p10 }
  0x20   :  { %951 = shalt.err (!%p948_p0)
}
  0x21   :  { %s983_s1 = smov 64   ;;  %s984_s27 = smov 4  }
  0x22   :  { %44 = dma.hbm_to_vmem [thread:$0]  %s1021_s2, 4096, %s39_s22, [#allocation6], %s983_s1, %s983_s1, %s984_s27  }
  0x23   :  { %972 = dma.done.wait [#allocation3], 32  }
  0x24   :  { %973 = vsyncadd [#allocation3], 4294967264 }
  0x25   :  { %974 = dma.done.wait [#allocation6], 8192  }
  0x26   :  { %975 = vsyncadd [#allocation6], 4294959104  ;;  %v985_v0 = vmov 0   ;;  %v812_v1 = vld [vmem:[#allocation5 + $0xe4] ss:$16 sps:$4 sm:$0xff]   ;;  %v860_v33 = vld [vmem:[#allocation7 + $0x78] sm:$0xff]  }
  0x27   :  { %280 = vmatprep.mubr.bf16.mxu0 %v985_v0  ;;  %321 = vmatprep.mubr.bf16.mxu1 %v985_v0  ;;  %v814_v2 = vld [vmem:[#allocation5 + $0xec] ss:$16 sps:$4 sm:$0xff]   ;;  %v816_v3 = vld [vmem:[#allocation5 + $0xe0] ss:$16 sps:$4 sm:$0xff]   ;;  %v817_v4 = vld [vmem:[#allocation5 + $0xe8] ss:$16 sps:$4 sm:$0xff]  }
  0x28   :  { %248 = vmatprep.subr.bf16.mxu0 %v812_v1  ;;  %289 = vmatprep.subr.bf16.mxu1 %v814_v2  ;;  %v818_v5 = vld [vmem:[#allocation5 + $0xc4] ss:$16 sps:$4 sm:$0xff]   ;;  %v820_v6 = vld [vmem:[#allocation5 + $0xcc] ss:$16 sps:$4 sm:$0xff]   ;;  %v822_v7 = vld [vmem:[#allocation5 + $0xc0] ss:$16 sps:$4 sm:$0xff]  }
  0x29   :  { %249 = vmatpush1.bf16.msra.mxu0 %v816_v3  ;;  %290 = vmatpush1.bf16.msra.mxu1 %v817_v4  ;;  %v823_v8 = vld [vmem:[#allocation5 + $0xc8] ss:$16 sps:$4 sm:$0xff]   ;;  %v824_v9 = vld [vmem:[#allocation5 + $0xa4] ss:$16 sps:$4 sm:$0xff]   ;;  %v826_v10 = vld [vmem:[#allocation5 + $0xac] ss:$16 sps:$4 sm:$0xff]  }
  0x2a   :  { %250 = vmatprep.subr.bf16.mxu0 %v818_v5  ;;  %291 = vmatprep.subr.bf16.mxu1 %v820_v6  ;;  %v828_v11 = vld [vmem:[#allocation5 + $0xa0] ss:$16 sps:$4 sm:$0xff]   ;;  %v829_v12 = vld [vmem:[#allocation5 + $0xa8] ss:$16 sps:$4 sm:$0xff]   ;;  %v830_v13 = vld [vmem:[#allocation5 + $0x84] ss:$16 sps:$4 sm:$0xff]  }
  0x2b   :  { %v832_v14 = vld [vmem:[#allocation5 + $0x8c] ss:$16 sps:$4 sm:$0xff]   ;;  %v834_v15 = vld [vmem:[#allocation5 + $0x80] ss:$16 sps:$4 sm:$0xff]   ;;  %v835_v16 = vld [vmem:[#allocation5 + $0x88] ss:$16 sps:$4 sm:$0xff]  }
  0x2c   :  { %v836_v17 = vld [vmem:[#allocation5 + $0x64] ss:$16 sps:$4 sm:$0xff]   ;;  %v838_v18 = vld [vmem:[#allocation5 + $0x6c] ss:$16 sps:$4 sm:$0xff]   ;;  %v840_v19 = vld [vmem:[#allocation5 + $0x60] ss:$16 sps:$4 sm:$0xff]  }
  0x2d   :  { %251 = vmatpush1.bf16.msra.mxu0 %v822_v7  ;;  %292 = vmatpush1.bf16.msra.mxu1 %v823_v8  ;;  %v841_v20 = vld [vmem:[#allocation5 + $0x68] ss:$16 sps:$4 sm:$0xff]   ;;  %v842_v21 = vld [vmem:[#allocation5 + $0x44] ss:$16 sps:$4 sm:$0xff]   ;;  %v844_v22 = vld [vmem:[#allocation5 + $0x4c] ss:$16 sps:$4 sm:$0xff]  }
  0x2e   :  { %252 = vmatprep.subr.bf16.mxu0 %v824_v9  ;;  %293 = vmatprep.subr.bf16.mxu1 %v826_v10  ;;  %v846_v23 = vld [vmem:[#allocation5 + $0x40] ss:$16 sps:$4 sm:$0xff]   ;;  %v847_v24 = vld [vmem:[#allocation5 + $0x48] ss:$16 sps:$4 sm:$0xff]   ;;  %v848_v25 = vld [vmem:[#allocation5 + $0x24] ss:$16 sps:$4 sm:$0xff]  }
  0x2f   :  { %v850_v26 = vld [vmem:[#allocation5 + $0x2c] ss:$16 sps:$4 sm:$0xff]   ;;  %v852_v27 = vld [vmem:[#allocation5 + $0x20] ss:$16 sps:$4 sm:$0xff]   ;;  %v853_v28 = vld [vmem:[#allocation5 + $0x28] ss:$16 sps:$4 sm:$0xff]  }
  0x30   :  { %v854_v29 = vld [vmem:[#allocation5 + $0x4] ss:$16 sps:$4 sm:$0xff]   ;;  %v856_v30 = vld [vmem:[#allocation5 + $0xc] ss:$16 sps:$4 sm:$0xff]   ;;  %v858_v31 = vld [vmem:[#allocation5] ss:$16 sps:$4 sm:$0xff]  }
  0x31   :  { %253 = vmatpush1.bf16.msra.mxu0 %v828_v11  ;;  %294 = vmatpush1.bf16.msra.mxu1 %v829_v12  ;;  %v859_v32 = vld [vmem:[#allocation5 + $0x8] ss:$16 sps:$4 sm:$0xff]   ;;  %v55_v35 = vld [vmem:[#allocation2] sm:$0x3]  ;;  %v864_v38 = vld [vmem:[#allocation7 + $0x70] sm:$0xff]   ;;  %s986_s0 = smov [#allocation8]  }
  0x32   :  { %254 = vmatprep.subr.bf16.mxu0 %v830_v13  ;;  %295 = vmatprep.subr.bf16.mxu1 %v832_v14  ;;  %v861_v34 = vld [vmem:[#allocation7 + $0xf8] sm:$0xff]   ;;  %v865_v39 = vld [vmem:[#allocation7 + $0xf0] sm:$0xff]   ;;  %v868_v42 = vld [vmem:[#allocation7 + $0x68] sm:$0xff]   ;;  %s685_s2 = sshll.u32 %s986_s0, 4  ;;  %s686_s2 = int_to_ptr.vmem [resolvable:$true] %s685_s2 }
  0x33   :  { %v862_v36 = vld [vmem:[#allocation7 + $0x38] sm:$0xff]   ;;  %v866_v40 = vld [vmem:[#allocation7 + $0x30] sm:$0xff]   ;;  %v869_v43 = vld [vmem:[#allocation7 + $0xe8] sm:$0xff]   ;;  %s952_s30 = scalar_lea.vmem %s686_s2, 64  ;;  %p957_p2 = scmp.lt.s32.totalorder %s686_s2, %s686_s2 }
  0x34   :  { %v863_v37 = vld [vmem:[#allocation7 + $0xb8] sm:$0xff]   ;;  %v867_v41 = vld [vmem:[#allocation7 + $0xb0] sm:$0xff]   ;;  %v870_v44 = vld [vmem:[#allocation7 + $0x28] sm:$0xff]   ;;  %p953_p1 = scmp.ne.s32.totalorder %s686_s2, %s952_s30  ;;  %p958_p3 = scmp.lt.s32.totalorder %s952_s30, %s952_s30 }
  0x35   :  { %255 = vmatpush1.bf16.msra.mxu0 %v834_v15  ;;  %296 = vmatpush1.bf16.msra.mxu1 %v835_v16  ;;  %v871_v45 = vld [vmem:[#allocation7 + $0xa8] sm:$0xff]   ;;  %v872_v46 = vld [vmem:[#allocation7 + $0x60] sm:$0xff]   ;;  %v876_v50 = vld [vmem:[#allocation7 + $0x58] sm:$0xff]  }
  0x36   :  { %256 = vmatprep.subr.bf16.mxu0 %v836_v17  ;;  %297 = vmatprep.subr.bf16.mxu1 %v838_v18  ;;  %v873_v47 = vld [vmem:[#allocation7 + $0xe0] sm:$0xff]   ;;  %v877_v51 = vld [vmem:[#allocation7 + $0xd8] sm:$0xff]   ;;  %v880_v54 = vld [vmem:[#allocation7 + $0x50] sm:$0xff]   ;;  %p959_p4 = por %p958_p3, %p957_p2 }
  0x37   :  { %v874_v48 = vld [vmem:[#allocation7 + $0x20] sm:$0xff]   ;;  %v878_v52 = vld [vmem:[#allocation7 + $0x18] sm:$0xff]   ;;  %v881_v55 = vld [vmem:[#allocation7 + $0xd0] sm:$0xff]  }
  0x38   :  { %v875_v49 = vld [vmem:[#allocation7 + $0xa0] sm:$0xff]   ;;  %v879_v53 = vld [vmem:[#allocation7 + $0x98] sm:$0xff]   ;;  %v882_v56 = vld [vmem:[#allocation7 + $0x10] sm:$0xff]   ;;  %p960_p5 = pnand %p959_p4, %p953_p1 }
  0x39   :  { %257 = vmatpush1.bf16.msra.mxu0 %v840_v19  ;;  %298 = vmatpush1.bf16.msra.mxu1 %v841_v20  ;;  %v883_v57 = vld [vmem:[#allocation7 + $0x90] sm:$0xff]   ;;  %v884_v58 = vld [vmem:[#allocation7 + $0x48] sm:$0xff]   ;;  %v888_v62 = vld [vmem:[#allocation7 + $0x40] sm:$0xff]  }
  0x3a   :  { %258 = vmatprep.subr.bf16.mxu0 %v842_v21  ;;  %299 = vmatprep.subr.bf16.mxu1 %v844_v22  ;;  %v885_v59 = vld [vmem:[#allocation7 + $0xc8] sm:$0xff]   ;;  %v889_v63 = vld [vmem:[#allocation7 + $0xc0] sm:$0xff]  }
  0x3b   :  { %v886_v60 = vld [vmem:[#allocation7 + $0x8] sm:$0xff]   ;;  %v890_v0 = vld [vmem:[#allocation7] sm:$0xff]  }
  0x3c   :  { %v887_v61 = vld [vmem:[#allocation7 + $0x88] sm:$0xff]   ;;  %v891_v1 = vld [vmem:[#allocation7 + $0x80] sm:$0xff]  }
  0x3d   :  { %259 = vmatpush1.bf16.msra.mxu0 %v846_v23  ;;  %300 = vmatpush1.bf16.msra.mxu1 %v847_v24 }
  0x3e   :  { %260 = vmatprep.subr.bf16.mxu0 %v848_v25  ;;  %301 = vmatprep.subr.bf16.mxu1 %v850_v26 }
  0x41   :  { %261 = vmatpush1.bf16.msra.mxu0 %v852_v27  ;;  %302 = vmatpush1.bf16.msra.mxu1 %v853_v28 }
  0x42   :  { %262 = vmatprep.subr.bf16.mxu0 %v854_v29  ;;  %303 = vmatprep.subr.bf16.mxu1 %v856_v30 }
  0x45   :  { %263 = vmatpush1.bf16.msra.mxu0 %v858_v31  ;;  %304 = vmatpush1.bf16.msra.mxu1 %v859_v32 }
  0x46   :  { %759 = vmatprep.subr.bf16.mxu0 %v860_v33  ;;  %781 = vmatprep.subr.bf16.mxu1 %v861_v34 }
  0x48   :  { %281 = vmatmul.mubr.bf16.vlgmr.msra.gmra.mxu0 %v55_v35  ;;  %322 = vmatmul.mubr.bf16.vlgmr.msra.gmra.mxu1 %v55_v35 }
  0x49   :  { %760 = vmatpush3.bf16.msra.mxu0 %v862_v36  ;;  %782 = vmatpush3.bf16.msra.mxu1 %v863_v37 }
  0x4a   :  { %761 = vmatprep.subr.bf16.mxu0 %v864_v38  ;;  %783 = vmatprep.subr.bf16.mxu1 %v865_v39 }
  0x4d   :  { %762 = vmatpush3.bf16.msra.mxu0 %v866_v40  ;;  %784 = vmatpush3.bf16.msra.mxu1 %v867_v41 }
  0x4e   :  { %763 = vmatprep.subr.bf16.mxu0 %v868_v42  ;;  %785 = vmatprep.subr.bf16.mxu1 %v869_v43 }
  0x51   :  { %764 = vmatpush3.bf16.msra.mxu0 %v870_v44  ;;  %786 = vmatpush3.bf16.msra.mxu1 %v871_v45 }
  0x52   :  { %765 = vmatprep.subr.bf16.mxu0 %v872_v46  ;;  %787 = vmatprep.subr.bf16.mxu1 %v873_v47 }
  0x55   :  { %766 = vmatpush3.bf16.msra.mxu0 %v874_v48  ;;  %788 = vmatpush3.bf16.msra.mxu1 %v875_v49 }
  0x56   :  { %767 = vmatprep.subr.bf16.mxu0 %v876_v50  ;;  %789 = vmatprep.subr.bf16.mxu1 %v877_v51 }
  0x59   :  { %768 = vmatpush3.bf16.msra.mxu0 %v878_v52  ;;  %790 = vmatpush3.bf16.msra.mxu1 %v879_v53 }
  0x5a   :  { %769 = vmatprep.subr.bf16.mxu0 %v880_v54  ;;  %791 = vmatprep.subr.bf16.mxu1 %v881_v55 }
  0x5d   :  { %770 = vmatpush3.bf16.msra.mxu0 %v882_v56  ;;  %792 = vmatpush3.bf16.msra.mxu1 %v883_v57 }
  0x5e   :  { %771 = vmatprep.subr.bf16.mxu0 %v884_v58  ;;  %793 = vmatprep.subr.bf16.mxu1 %v885_v59 }
  0x61   :  { %772 = vmatpush3.bf16.msra.mxu0 %v886_v60  ;;  %794 = vmatpush3.bf16.msra.mxu1 %v887_v61 }
  0x62   :  { %773 = vmatprep.subr.bf16.mxu0 %v888_v62  ;;  %795 = vmatprep.subr.bf16.mxu1 %v889_v63 }
  0x65   :  { %774 = vmatpush3.bf16.msra.mxu0 %v890_v0  ;;  %796 = vmatpush3.bf16.msra.mxu1 %v891_v1 }
 0x108   :  { %v282_v2 = vpop.f32.mrf.mxu0  ;;  %v323_v3 = vpop.f32.mrf.mxu1 }
 0x109   :  { %v330_v4 = vmax.f32 %v282_v2, 0.0  ;;  %v332_v5 = vmax.f32 %v323_v3, 0.0 }
 0x10a   :  { %v284_v6 = vpop.f32.mrf.mxu0  ;;  %v325_v7 = vpop.f32.mrf.mxu1 }
 0x10b   :  { %v331_v8 = vmax.f32 %v284_v6, 0.0  ;;  %v333_v9 = vmax.f32 %v325_v7, 0.0  ;;  %v334_v10 = vmul.f32 %v330_v4, %v330_v4  ;;  %v336_v11 = vmul.f32 %v332_v5, %v332_v5 }
 0x10c   :  { %v286_v12 = vpop.f32.mrf.mxu0  ;;  %v327_v13 = vpop.f32.mrf.mxu1 }
 0x10d   :  { %v335_v14 = vmul.f32 %v331_v8, %v331_v8  ;;  %v337_v15 = vmul.f32 %v333_v9, %v333_v9  ;;  %v338_v20 = vpack.c.bf16 %v334_v10, %v334_v10  ;;  %v340_v21 = vpack.c.bf16 %v336_v11, %v336_v11 }
 0x10e   :  { %v287_v16 = vpop.f32.mrf.mxu0  ;;  %v328_v17 = vpop.f32.mrf.mxu1 }
 0x10f   :  { %v339_v18 = vpack.c.bf16 %v335_v14, %v335_v14  ;;  %v341_v19 = vpack.c.bf16 %v337_v15, %v337_v15 }
 0x111   :  { %630 = vmatprep.mubr.bf16.mxu0 %v339_v18  ;;  %670 = vmatprep.mubr.bf16.mxu1 %v341_v19 }
 0x112   :  { %631 = vmatmul.mubr.bf16.vlgmr.msra.gmra.mxu0 %v338_v20  ;;  %671 = vmatmul.mubr.bf16.vlgmr.msra.gmra.mxu1 %v340_v21 }
 0x1d2   :  { %v775_v22 = vpop.f32.mrf.mxu0  ;;  %v797_v23 = vpop.f32.mrf.mxu1 }
 0x1d4   :  { %v776_v24 = vpop.f32.mrf.mxu0  ;;  %v798_v25 = vpop.f32.mrf.mxu1 }
 0x1d5   :  { %v777_v26 = vadd.f32 %v776_v24, %v775_v22  ;;  %v799_v27 = vadd.f32 %v798_v25, %v797_v23 }
 0x1d6   :  { %v778_v28 = vpop.f32.mrf.mxu0  ;;  %v800_v29 = vpop.f32.mrf.mxu1 }
 0x1d7   :  { %v673_v30 = vadd.f32 %v799_v27, %v777_v26 }
 0x1d8   :  { %v779_v31 = vpop.f32.mrf.mxu0  ;;  %v801_v32 = vpop.f32.mrf.mxu1 }
 0x1d9   :  { %678 = vst [vmem:[#allocation8] sm:$0xf] %v673_v30 }
 0x1da   :  { %963 = shalt.err (!%p960_p5)
}
 0x1db   :  { %688 = dma.vmem_to_hbm [thread:$0]  %s686_s2, 64, %s1022_s3, [#allocation4]  }
 0x1dc   :  { %976 = dma.done.wait [#allocation4], 64  }
 0x1dd   :  { %977 = vsyncadd [#allocation4], 4294967232 }
 0x1de   :  { %692 = vsyncpa [#allocation3], 1 }
 0x1df   :  { %693 = vsyncpa [#allocation6], 1 }
 0x1e0   :  { %694 = vsyncpa [#allocation4], 1 }

</bundles_post_ra>
